<compile_context>
chip_gen: v6e
topology: v6e:2x2x1
jax: 0.10.0
libtpu: 0.0.40
codegen_flags: <defaults>
</compile_context>

<pallas_src>
import functools
import math

import jax
import jax.numpy as jnp
from jax import lax
from jax.experimental import pallas as pl
from jax.experimental.pallas import tpu as pltpu


def _patch_merging_kernel(xe_ref, xo_ref, we_ref, wo_ref, b_ref, out_ref, *, eps: float):
    # xe_ref / xo_ref: (th, 1, Wh, 2C) even-h / odd-h slabs of the 2x2 patch groups.
    # Each (hh, ww) pair's 4C feature group = [xe row | xo row] (2C + 2C).
    th, _, wh, c2 = xe_ref.shape
    rows = th * wh
    inv_c4 = 1.0 / float(2 * c2)

    xe = xe_ref[...].reshape(rows, c2).astype(jnp.float32)
    xo = xo_ref[...].reshape(rows, c2).astype(jnp.float32)

    # LayerNorm stats over the (virtual) 4C axis, biased variance (nn.LayerNorm).
    mu = (jnp.sum(xe, axis=-1, keepdims=True)
          + jnp.sum(xo, axis=-1, keepdims=True)) * inv_c4
    ec = xe - mu
    oc = xo - mu
    var = (jnp.sum(ec * ec, axis=-1, keepdims=True)
           + jnp.sum(oc * oc, axis=-1, keepdims=True)) * inv_c4
    inv = lax.rsqrt(var + eps)                     # EUP slot

    # gamma is folded into we/wo and beta into b_ref (wrapper).  Two partial MXU
    # matmuls over the K-split weight; accumulate in f32, cast on store.
    ye = (ec * inv).astype(we_ref.dtype)
    yo = (oc * inv).astype(wo_ref.dtype)
    acc = jnp.dot(ye, we_ref[...], preferred_element_type=jnp.float32)
    acc = acc + jnp.dot(yo, wo_ref[...], preferred_element_type=jnp.float32)
    out_ref[...] = (acc + b_ref[...]).astype(out_ref.dtype)


def patch_merging_pallas(x, norm_weight, norm_bias, reduction_weight,
                         *, eps: float = 1e-5, block_rows: int = 1024,
                         weight_dtype=jnp.bfloat16):
    """x: (B, L, C) with L = H*W, H = W.  reduction_weight: (out_channels, 4C) torch layout."""
    B, L, C = x.shape
    H = W = int(round(L ** 0.5))
    assert H * W == L and H % 2 == 0 and W % 2 == 0, "L must be a square with even side"
    C2, C4 = 2 * C, 4 * C
    Co = reduction_weight.shape[0]
    Hh, Wh = H // 2, W // 2
    R = B * Hh                       # number of (b, hh) row-pairs
    M = R * Wh                       # number of merged-patch output rows

    # ---- Free reshape (pure row-major regrouping, zero HBM traffic) ----
    # (B, H*W, C) -> (R, 2, Wh, 2C); axis 1 is the h-parity, last axis is
    # [w-even C | w-odd C].  So slab hp=0 holds [x0|x2] and hp=1 holds [x1|x3].
    x5 = x.reshape(R, 2, Wh, C2)

    # ---- Fold LN affine into the reduction weight/bias; split K by h-parity ----
    # torch cat order along 4C: [x0 (he,we) | x1 (ho,we) | x2 (he,wo) | x3 (ho,wo)].
    wt = reduction_weight.astype(jnp.float32).T                       # (4C, Co)
    gw = norm_weight.astype(jnp.float32)[:, None] * wt                # gamma folded
    bias = norm_bias.astype(jnp.float32)[None, :] @ wt                # (1, Co) beta folded
    w_even = jnp.concatenate([gw[0:C], gw[2 * C:3 * C]], axis=0)      # rows for [x0 | x2]
    w_odd = jnp.concatenate([gw[C:2 * C], gw[3 * C:4 * C]], axis=0)   # rows for [x1 | x3]

    # Lane-dense output: pad Co up to a multiple of 128 with zero weight columns.
    Co_pad = ((Co + 127) // 128) * 128
    if Co_pad != Co:
        w_even = jnp.pad(w_even, ((0, 0), (0, Co_pad - Co)))
        w_odd = jnp.pad(w_odd, ((0, 0), (0, Co_pad - Co)))
        bias = jnp.pad(bias, ((0, 0), (0, Co_pad - Co)))
    w_even = w_even.astype(weight_dtype)     # bf16: fast MXU path + half weight DMA
    w_odd = w_odd.astype(weight_dtype)

    # ---- Row-tile sizing: always tiled, bounded by a VMEM budget (no tm=M fallback) ----
    xb = jnp.dtype(x.dtype).itemsize
    wb = jnp.dtype(weight_dtype).itemsize
    ob = jnp.dtype(x.dtype).itemsize
    vmem_budget = 20 << 20                     # safe under default scoped VMEM on v5e/v6e/v7x
    w_resident_bytes = 2 * C2 * Co_pad * wb
    resident = 2 * w_resident_bytes + 2 * Co_pad * 4          # weights + bias (2 bufs)
    per_row = (2 * 2 * C2 * xb                 # double-buffered even/odd input slabs
               + 2 * Co_pad * ob               # double-buffered output tile
               + 4 * C4 * 4                    # f32 working copies inside the kernel
               + Co_pad * 4)                   # f32 accumulator
    rows_cap = max(Wh, (vmem_budget - resident) // max(per_row, 1))
    rows_target = max(Wh, min(block_rows, rows_cap))
    th = min(max(1, rows_target // Wh), R)
    if th < R:
        # Keep the output tile's sublane dim (th*Wh) a multiple of 16 so the
        # (8/16, 128) layout constraint holds for f32 and bf16 outputs alike.
        q = 16 // math.gcd(Wh, 16)
        th = max((th // q) * q, min(q, R))
    grid = (pl.cdiv(R, th),)

    # Single-buffer the resident weights only when they are big (v7x big-stage case).
    w_spec_kwargs = (dict(pipeline_mode=pl.Buffered(1))
                     if w_resident_bytes >= (8 << 20) else {})

    kernel = functools.partial(_patch_merging_kernel, eps=eps)
    out = pl.pallas_call(
        kernel,
        out_shape=jax.ShapeDtypeStruct((M, Co_pad), x.dtype),
        grid=grid,
        in_specs=[
            pl.BlockSpec((th, 1, Wh, C2), lambda i: (i, 0, 0, 0)),          # even-h slab
            pl.BlockSpec((th, 1, Wh, C2), lambda i: (i, 1, 0, 0)),          # odd-h slab
            pl.BlockSpec((C2, Co_pad), lambda i: (0, 0), **w_spec_kwargs),  # W for [x0|x2]
            pl.BlockSpec((C2, Co_pad), lambda i: (0, 0), **w_spec_kwargs),  # W for [x1|x3]
            pl.BlockSpec((1, Co_pad), lambda i: (0, 0)),                    # folded bias
        ],
        out_specs=pl.BlockSpec((th * Wh, Co_pad), lambda i: (i, 0)),
        compiler_params=pltpu.CompilerParams(
            dimension_semantics=("parallel",),          # row-parallel (megacore on v7x)
            vmem_limit_bytes=40 * 1024 * 1024),
    )(x5, x5, w_even, w_odd, bias)

    # Drop the lane padding and restore (B, L/4, Co).  Output stays in x.dtype;
    # downstream callers that accept bf16 can cast to halve the write traffic.
    if Co_pad != Co:
        out = out[:, :Co]
    return out.reshape(B, Hh * Wh, Co)


def patch_merging_reference(x, norm_weight, norm_bias, reduction_weight, *, eps: float = 1e-5):
    """Pure-JAX f32 reference matching the PyTorch forward."""
    B, L, C = x.shape
    H = W = int(round(L ** 0.5))
    xr = x.reshape(B, H, W, C)
    x0 = xr[:, 0::2, 0::2, :]
    x1 = xr[:, 1::2, 0::2, :]
    x2 = xr[:, 0::2, 1::2, :]
    x3 = xr[:, 1::2, 1::2, :]
    xm = jnp.concatenate([x0, x1, x2, x3], axis=-1).reshape(B, -1, 4 * C)
    mu = jnp.mean(xm, axis=-1, keepdims=True)
    var = jnp.mean((xm - mu) ** 2, axis=-1, keepdims=True)
    xn = (xm - mu) / jnp.sqrt(var + eps) * norm_weight + norm_bias
    return jnp.einsum("blc,oc->blo", xn, reduction_weight)


if __name__ == "__main__":
    # Small shapes consistent with the module: B=2, H=W=16 (L=256), C=32, out=64.
    B, H, W, C = 2, 16, 16, 32
    L = H * W
    C4 = 4 * C
    out_channels = 2 * C

    key = jax.random.PRNGKey(0)
    kx, kg, kb, kw = jax.random.split(key, 4)

    x = jax.random.normal(kx, (B, L, C), dtype=jnp.float32)
    norm_weight = 1.0 + 0.1 * jax.random.normal(kg, (C4,), dtype=jnp.float32)
    norm_bias = 0.1 * jax.random.normal(kb, (C4,), dtype=jnp.float32)
    bound = 1.0 / (C4 ** 0.5)
    reduction_weight = jax.random.uniform(kw, (out_channels, C4),
                                          minval=-bound, maxval=bound, dtype=jnp.float32)

    out = patch_merging_pallas(x, norm_weight, norm_bias, reduction_weight)
    out = jax.block_until_ready(out)

    ref = patch_merging_reference(x, norm_weight, norm_bias, reduction_weight)
    assert out.shape == (B, L // 4, out_channels)
    # Tolerance loosened vs. the pure-f32 reference because the reduction weight and
    # the normalized activations go through bf16 before the MXU (perf feedback).
    assert jnp.allclose(out, ref, atol=5e-2, rtol=5e-2), "mismatch vs reference"

    print("KERNEL_OK")
</pallas_src>

<mosaic_0001>
module attributes {stable_mosaic.version = 11 : i64} {
  func.func @_patch_merging_kernel(%arg0: i32, %arg1: memref<16x1x8x64xf32, #tpu.memory_space<vmem>>, %arg2: memref<16x1x8x64xf32, #tpu.memory_space<vmem>>, %arg3: memref<64x128xbf16, #tpu.memory_space<vmem>>, %arg4: memref<64x128xbf16, #tpu.memory_space<vmem>>, %arg5: memref<1x128xf32, #tpu.memory_space<vmem>>, %arg6: memref<128x128xf32, #tpu.memory_space<vmem>>) attributes {dimension_semantics = [#tpu.dimension_semantics<parallel>], iteration_bounds = array<i64: 1>, scalar_prefetch = 0 : i64, scratch_operands = 0 : i64, tpu.core_type = #tpu.core_type<tc>, window_params = [{transform_indices = @transform_0, window_bounds = array<i64: 16, 1, 8, 64>}, {transform_indices = @transform_1, window_bounds = array<i64: 16, 1, 8, 64>}, {pipeline_mode = #tpu.pipeline_mode<synchronous>, transform_indices = @transform_2, window_bounds = array<i64: 64, 128>}, {pipeline_mode = #tpu.pipeline_mode<synchronous>, transform_indices = @transform_3, window_bounds = array<i64: 64, 128>}, {pipeline_mode = #tpu.pipeline_mode<synchronous>, transform_indices = @transform_4, window_bounds = array<i64: 1, 128>}, {transform_indices = @transform_5, window_bounds = array<i64: 128, 128>}]} {
    %c0 = arith.constant 0 : index
    %c0_0 = arith.constant 0 : index
    %c0_1 = arith.constant 0 : index
    %c0_2 = arith.constant 0 : index
    %0 = vector.load %arg1[%c0, %c0_0, %c0_1, %c0_2] : memref<16x1x8x64xf32, #tpu.memory_space<vmem>>, vector<16x1x8x64xf32>
    %1 = vector.shape_cast %0 : vector<16x1x8x64xf32> to vector<128x64xf32>
    %c0_3 = arith.constant 0 : index
    %c0_4 = arith.constant 0 : index
    %c0_5 = arith.constant 0 : index
    %c0_6 = arith.constant 0 : index
    %2 = vector.load %arg2[%c0_3, %c0_4, %c0_5, %c0_6] : memref<16x1x8x64xf32, #tpu.memory_space<vmem>>, vector<16x1x8x64xf32>
    %3 = vector.shape_cast %2 : vector<16x1x8x64xf32> to vector<128x64xf32>
    %cst = arith.constant dense<0.000000e+00> : vector<128xf32>
    %4 = vector.multi_reduction <add>, %1, %cst [1] : vector<128x64xf32> to vector<128xf32>
    %5 = vector.shape_cast %4 : vector<128xf32> to vector<128x1xf32>
    %cst_7 = arith.constant dense<0.000000e+00> : vector<128xf32>
    %6 = vector.multi_reduction <add>, %3, %cst_7 [1] : vector<128x64xf32> to vector<128xf32>
    %7 = vector.shape_cast %6 : vector<128xf32> to vector<128x1xf32>
    %8 = arith.addf %5, %7 : vector<128x1xf32>
    %cst_8 = arith.constant 7.812500e-03 : f32
    %9 = vector.broadcast %cst_8 : f32 to vector<128x1xf32>
    %10 = arith.mulf %8, %9 : vector<128x1xf32>
    %11 = vector.broadcast %10 : vector<128x1xf32> to vector<128x64xf32>
    %12 = arith.subf %1, %11 : vector<128x64xf32>
    %13 = vector.broadcast %10 : vector<128x1xf32> to vector<128x64xf32>
    %14 = arith.subf %3, %13 : vector<128x64xf32>
    %15 = arith.mulf %12, %12 : vector<128x64xf32>
    %cst_9 = arith.constant dense<0.000000e+00> : vector<128xf32>
    %16 = vector.multi_reduction <add>, %15, %cst_9 [1] : vector<128x64xf32> to vector<128xf32>
    %17 = vector.shape_cast %16 : vector<128xf32> to vector<128x1xf32>
    %18 = arith.mulf %14, %14 : vector<128x64xf32>
    %cst_10 = arith.constant dense<0.000000e+00> : vector<128xf32>
    %19 = vector.multi_reduction <add>, %18, %cst_10 [1] : vector<128x64xf32> to vector<128xf32>
    %20 = vector.shape_cast %19 : vector<128xf32> to vector<128x1xf32>
    %21 = arith.addf %17, %20 : vector<128x1xf32>
    %cst_11 = arith.constant 7.812500e-03 : f32
    %22 = vector.broadcast %cst_11 : f32 to vector<128x1xf32>
    %23 = arith.mulf %21, %22 : vector<128x1xf32>
    %cst_12 = arith.constant 9.99999974E-6 : f32
    %24 = vector.broadcast %cst_12 : f32 to vector<128x1xf32>
    %25 = arith.addf %23, %24 : vector<128x1xf32>
    %26 = math.rsqrt %25 : vector<128x1xf32>
    %27 = vector.broadcast %26 : vector<128x1xf32> to vector<128x64xf32>
    %28 = arith.mulf %12, %27 : vector<128x64xf32>
    %29 = arith.truncf %28 : vector<128x64xf32> to vector<128x64xbf16>
    %30 = vector.broadcast %26 : vector<128x1xf32> to vector<128x64xf32>
    %31 = arith.mulf %14, %30 : vector<128x64xf32>
    %32 = arith.truncf %31 : vector<128x64xf32> to vector<128x64xbf16>
    %c0_13 = arith.constant 0 : index
    %c0_14 = arith.constant 0 : index
    %33 = vector.load %arg3[%c0_13, %c0_14] : memref<64x128xbf16, #tpu.memory_space<vmem>>, vector<64x128xbf16>
    %cst_15 = arith.constant dense<0.000000e+00> : vector<128x128xf32>
    %34 = tpu.matmul %29, %33, %cst_15 {dimension_numbers = #tpu.dot_dimension_numbers<[1], [0], [0], [1], [0, 0, 1, 1], [], []>} : vector<128x64xbf16>, vector<64x128xbf16>, vector<128x128xf32> -> vector<128x128xf32>
    %c0_16 = arith.constant 0 : index
    %c0_17 = arith.constant 0 : index
    %35 = vector.load %arg4[%c0_16, %c0_17] : memref<64x128xbf16, #tpu.memory_space<vmem>>, vector<64x128xbf16>
    %cst_18 = arith.constant dense<0.000000e+00> : vector<128x128xf32>
    %36 = tpu.matmul %32, %35, %cst_18 {dimension_numbers = #tpu.dot_dimension_numbers<[1], [0], [0], [1], [0, 0, 1, 1], [], []>} : vector<128x64xbf16>, vector<64x128xbf16>, vector<128x128xf32> -> vector<128x128xf32>
    %37 = arith.addf %34, %36 : vector<128x128xf32>
    %c0_19 = arith.constant 0 : index
    %c0_20 = arith.constant 0 : index
    %38 = vector.load %arg5[%c0_19, %c0_20] : memref<1x128xf32, #tpu.memory_space<vmem>>, vector<1x128xf32>
    %39 = vector.broadcast %38 : vector<1x128xf32> to vector<128x128xf32>
    %40 = arith.addf %37, %39 : vector<128x128xf32>
    %c0_21 = arith.constant 0 : index
    %c0_22 = arith.constant 0 : index
    %41 = vector.load %arg6[%c0_21, %c0_22] : memref<128x128xf32, #tpu.memory_space<vmem>>, vector<128x128xf32>
    tpu.vector_store %arg6[%c0_21, %c0_22], %40 {strides = array<i32>} : memref<128x128xf32, #tpu.memory_space<vmem>>, vector<128x128xf32>,
    return
  }
  func.func @transform_0(%arg0: i32) -> (i32, i32, i32, i32) {
    %c0_i32 = arith.constant 0 : i32
    %c0_i32_0 = arith.constant 0 : i32
    %c0_i32_1 = arith.constant 0 : i32
    %c0_i32_2 = arith.constant 0 : i32
    return %arg0, %c0_i32, %c0_i32_0, %c0_i32_1 : i32, i32, i32, i32
  }
  func.func @transform_1(%arg0: i32) -> (i32, i32, i32, i32) {
    %c1_i32 = arith.constant 1 : i32
    %c0_i32 = arith.constant 0 : i32
    %c0_i32_0 = arith.constant 0 : i32
    %c0_i32_1 = arith.constant 0 : i32
    return %arg0, %c1_i32, %c0_i32, %c0_i32_0 : i32, i32, i32, i32
  }
  func.func @transform_2(%arg0: i32) -> (i32, i32) {
    %c0_i32 = arith.constant 0 : i32
    %c0_i32_0 = arith.constant 0 : i32
    %c0_i32_1 = arith.constant 0 : i32
    return %c0_i32, %c0_i32_0 : i32, i32
  }
  func.func @transform_3(%arg0: i32) -> (i32, i32) {
    %c0_i32 = arith.constant 0 : i32
    %c0_i32_0 = arith.constant 0 : i32
    %c0_i32_1 = arith.constant 0 : i32
    return %c0_i32, %c0_i32_0 : i32, i32
  }
  func.func @transform_4(%arg0: i32) -> (i32, i32) {
    %c0_i32 = arith.constant 0 : i32
    %c0_i32_0 = arith.constant 0 : i32
    %c0_i32_1 = arith.constant 0 : i32
    return %c0_i32, %c0_i32_0 : i32, i32
  }
  func.func @transform_5(%arg0: i32) -> (i32, i32) {
    %c0_i32 = arith.constant 0 : i32
    %c0_i32_0 = arith.constant 0 : i32
    return %arg0, %c0_i32 : i32, i32
  }
}

</mosaic_0001>

<bundles_post_ra>
// kernel: tpu_custom_call.1
= control target key start
LH: loop header
LB: loop body
LE: loop exit
PB: predicated region body
PF: predicated region fallthrough
CT: control target
= control target key end

     0   :  { %10 = vsyncpa [#allocation3], 0  ;;  %s1584_s0 = inlined_call_operand.hbm [shape: f32[16,2,8,64], index: 0, kind: input, shape index: {}]   ;;  %s1585_s1 = inlined_call_operand.hbm [shape: f32[16,2,8,64], index: 1, kind: input, shape index: {}]   ;;  %s1586_s2 = inlined_call_operand.hbm [shape: bf16[64,128], index: 2, kind: input, shape index: {}]   ;;  %s1587_s3 = inlined_call_operand.hbm [shape: bf16[64,128], index: 3, kind: input, shape index: {}]   ;;  %s1588_s4 = inlined_call_operand.vmem [shape: f32[1,128], index: 4, kind: input, shape index: {}]   ;;  %s1589_s5 = inlined_call_operand.hbm [shape: f32[128,128], index: 5, kind: output, shape index: {}]  }
   0x1   :  { %11 = vsyncpa [#allocation6], 0 }
   0x2   :  { %12 = vsyncpa [#allocation9], 0 }
   0x3   :  { %13 = vsyncpa [#allocation4], 0  ;;  %s31_s20 = scalar_lea.hbm %s1585_s1, 128  ;;  %s1133_s21 = smov [#allocation5]  }
   0x4   :  { %s32_s22 = sshll.u32 %s1133_s21, 4  ;;  %s1134_s23 = smov [#allocation2]   ;;  %s33_s22 = int_to_ptr.vmem [resolvable:$true] %s32_s22 }
   0x5   :  { %s19_s24 = sshll.u32 %s1134_s23, 4  ;;  %s1032_s25 = scalar_lea.vmem %s33_s22, 2048  ;;  %s20_s24 = int_to_ptr.vmem [resolvable:$true] %s19_s24 }
   0x6   :  { %p1033_p0 = scmp.ne.s32.totalorder %s33_s22, %s1032_s25  ;;  %p1037_p1 = scmp.lt.s32.totalorder %s33_s22, %s33_s22 }
   0x7   :  { %p1038_p2 = scmp.lt.s32.totalorder %s1032_s25, %s1032_s25 }
   0x9   :  { %p1039_p3 = por %p1038_p2, %p1037_p1 }
   0xb   :  { %p1040_p4 = pnand %p1039_p3, %p1033_p0 }
   0xd   :  { %1043 = shalt.err (!%p1040_p4)
}
   0xe   :  { %s1135_s26 = smov 256   ;;  %s1136_s27 = smov 128  }
   0xf   :  { %s1137_s28 = smov 8   ;;  %s1053_s1 = scalar_lea.vmem %s20_s24, 2048 }
  0x10   :  { %38 = dma.hbm_to_vmem [thread:$0]  %s31_s20, 2048, %s33_s22, [#allocation6], %s1135_s26, %s1136_s27, %s1137_s28  }
  0x11   :  { %p1054_p5 = scmp.ne.s32.totalorder %s20_s24, %s1053_s1  ;;  %p1058_p6 = scmp.lt.s32.totalorder %s20_s24, %s20_s24 }
  0x12   :  { %p1059_p7 = scmp.lt.s32.totalorder %s1053_s1, %s1053_s1 }
  0x14   :  { %p1060_p8 = por %p1059_p7, %p1058_p6 }
  0x16   :  { %p1061_p9 = pnand %p1060_p8, %p1054_p5 }
  0x18   :  { %1064 = shalt.err (!%p1061_p9)
}
  0x19   :  { %25 = dma.hbm_to_vmem [thread:$0]  %s1584_s0, 2048, %s20_s24, [#allocation3], %s1135_s26, %s1136_s27, %s1137_s28  }
  0x1a   :  { %s1138_s6 = smov [#allocation7]  }
  0x1b   :  { %s44_s7 = sshll.u32 %s1138_s6, 4  ;;  %s45_s7 = int_to_ptr.vmem [resolvable:$true] %s44_s7 }
  0x1c   :  { %s1073_s8 = scalar_lea.vmem %s45_s7, 512  ;;  %p1078_p11 = scmp.lt.s32.totalorder %s45_s7, %s45_s7 }
  0x1d   :  { %p1074_p10 = scmp.ne.s32.totalorder %s45_s7, %s1073_s8  ;;  %p1079_p12 = scmp.lt.s32.totalorder %s1073_s8, %s1073_s8 }
  0x1f   :  { %p1080_p13 = por %p1079_p12, %p1078_p11 }
  0x21   :  { %p1081_p0 = pnand %p1080_p13, %p1074_p10 }
  0x23   :  { %1084 = shalt.err (!%p1081_p0)
}
  0x24   :  { %s1139_s9 = smov 64   ;;  %s1140_s10 = smov 4  }
  0x25   :  { %50 = dma.hbm_to_vmem [thread:$0]  %s1586_s2, 512, %s45_s7, [#allocation6], %s1139_s9, %s1139_s9, %s1140_s10  }
  0x26   :  { %s1141_s13 = smov [#allocation8]  }
  0x27   :  { %s56_s14 = sshll.u32 %s1141_s13, 4  ;;  %s57_s14 = int_to_ptr.vmem [resolvable:$true] %s56_s14 }
  0x28   :  { %s1093_s0 = scalar_lea.vmem %s57_s14, 512  ;;  %p1098_p2 = scmp.lt.s32.totalorder %s57_s14, %s57_s14 }
  0x29   :  { %p1094_p1 = scmp.ne.s32.totalorder %s57_s14, %s1093_s0  ;;  %p1099_p3 = scmp.lt.s32.totalorder %s1093_s0, %s1093_s0 }
  0x2b   :  { %p1100_p4 = por %p1099_p3, %p1098_p2 }
  0x2d   :  { %p1101_p5 = pnand %p1100_p4, %p1094_p1 }
  0x2f   :  { %1104 = shalt.err (!%p1101_p5)
}
  0x30   :  { %62 = dma.hbm_to_vmem [thread:$0]  %s1587_s3, 512, %s57_s14, [#allocation9], %s1139_s9, %s1139_s9, %s1140_s10  }
  0x31   :  { %1125 = dma.done.wait [#allocation3], 2048  }
  0x32   :  { %1126 = vsyncadd [#allocation3], 4294965248 }
  0x33   :  { %1127 = dma.done.wait [#allocation6], 2560  }
  0x34   :  { %1128 = vsyncadd [#allocation6], 4294964736 }
  0x35   :  { %1129 = dma.done.wait [#allocation9], 512  }
  0x36   :  { %1130 = vsyncadd [#allocation9], 4294966784  ;;  %vm110_vm0 = vcmask 523264   ;;  %v1189_v0 = vld [vmem:[#allocation5] sm:$0xff]  ;;  %v1193_v2 = vld [vmem:[#allocation5 + $0x8] sm:$0xff] }
  0x37   :  { %v1191_v1 = vld [vmem:[#allocation2] sm:$0xff]  ;;  %v159_v3 = vsel %vm110_vm0, %v1189_v0, 0.0  ;;  %v1199_v5 = vld [vmem:[#allocation2 + $0x8] sm:$0xff]  ;;  %v162_v6 = vsel %vm110_vm0, %v1193_v2, 0.0  ;;  %v1205_v8 = vld [vmem:[#allocation2 + $0x18] sm:$0xff] }
  0x38   :  { %v111_v4 = vsel %vm110_vm0, %v1191_v1, 0.0  ;;  %160 = vadd.xlane.f32.xlu1 %v159_v3  ;;  %v114_v7 = vsel %vm110_vm0, %v1199_v5, 0.0  ;;  %v1207_v9 = vld [vmem:[#allocation2 + $0x10] sm:$0xff]  ;;  %v120_v10 = vsel %vm110_vm0, %v1205_v8, 0.0  ;;  %v1213_v12 = vld [vmem:[#allocation5 + $0x18] sm:$0xff]  ;;  %v1217_v14 = vld [vmem:[#allocation2 + $0x28] sm:$0xff] }
  0x39   :  { %112 = vadd.xlane.f32.xlu0 %v111_v4  ;;  %v117_v11 = vsel %vm110_vm0, %v1207_v9, 0.0  ;;  %v1215_v13 = vld [vmem:[#allocation5 + $0x10] sm:$0xff]  ;;  %v1219_v15 = vld [vmem:[#allocation2 + $0x20] sm:$0xff]  ;;  %v168_v16 = vsel %vm110_vm0, %v1213_v12, 0.0  ;;  %v126_v18 = vsel %vm110_vm0, %v1217_v14, 0.0  ;;  %v1229_v20 = vld [vmem:[#allocation5 + $0x28] sm:$0xff] }
  0x3a   :  { %v165_v17 = vsel %vm110_vm0, %v1215_v13, 0.0  ;;  %v123_v19 = vsel %vm110_vm0, %v1219_v15, 0.0  ;;  %v1231_v21 = vld [vmem:[#allocation5 + $0x20] sm:$0xff]  ;;  %v174_v22 = vsel %vm110_vm0, %v1229_v20, 0.0  ;;  %v1237_v24 = vld [vmem:[#allocation2 + $0x38] sm:$0xff]  ;;  %v1239_v25 = vld [vmem:[#allocation2 + $0x30] sm:$0xff] }
  0x3b   :  { %v171_v23 = vsel %vm110_vm0, %v1231_v21, 0.0  ;;  %v132_v26 = vsel %vm110_vm0, %v1237_v24, 0.0  ;;  %v129_v27 = vsel %vm110_vm0, %v1239_v25, 0.0  ;;  %v1245_v28 = vld [vmem:[#allocation5 + $0x38] sm:$0xff]  ;;  %v1247_v29 = vld [vmem:[#allocation5 + $0x30] sm:$0xff]  ;;  %v1253_v32 = vld [vmem:[#allocation2 + $0x48] sm:$0xff] }
  0x3c   :  { %163 = vadd.xlane.f32.xlu1 %v162_v6  ;;  %v180_v30 = vsel %vm110_vm0, %v1245_v28, 0.0  ;;  %v177_v31 = vsel %vm110_vm0, %v1247_v29, 0.0  ;;  %v1255_v33 = vld [vmem:[#allocation2 + $0x40] sm:$0xff]  ;;  %v138_v34 = vsel %vm110_vm0, %v1253_v32, 0.0  ;;  %v1261_v36 = vld [vmem:[#allocation5 + $0x48] sm:$0xff]  ;;  %v1269_v40 = vld [vmem:[#allocation2 + $0x58] sm:$0xff] }
  0x3d   :  { %115 = vadd.xlane.f32.xlu0 %v114_v7  ;;  %v135_v35 = vsel %vm110_vm0, %v1255_v33, 0.0  ;;  %v1263_v37 = vld [vmem:[#allocation5 + $0x40] sm:$0xff]  ;;  %v186_v38 = vsel %vm110_vm0, %v1261_v36, 0.0  ;;  %v1271_v41 = vld [vmem:[#allocation2 + $0x50] sm:$0xff]  ;;  %v144_v42 = vsel %vm110_vm0, %v1269_v40, 0.0  ;;  %v1277_v44 = vld [vmem:[#allocation5 + $0x58] sm:$0xff] }
  0x3e   :  { %v183_v39 = vsel %vm110_vm0, %v1263_v37, 0.0  ;;  %v141_v43 = vsel %vm110_vm0, %v1271_v41, 0.0  ;;  %v1279_v45 = vld [vmem:[#allocation5 + $0x50] sm:$0xff]  ;;  %v192_v46 = vsel %vm110_vm0, %v1277_v44, 0.0  ;;  %v1285_v48 = vld [vmem:[#allocation2 + $0x68] sm:$0xff]  ;;  %v1287_v49 = vld [vmem:[#allocation2 + $0x60] sm:$0xff] }
  0x3f   :  { %v189_v47 = vsel %vm110_vm0, %v1279_v45, 0.0  ;;  %v150_v50 = vsel %vm110_vm0, %v1285_v48, 0.0  ;;  %v147_v51 = vsel %vm110_vm0, %v1287_v49, 0.0  ;;  %v1293_v52 = vld [vmem:[#allocation5 + $0x68] sm:$0xff]  ;;  %v1295_v53 = vld [vmem:[#allocation5 + $0x60] sm:$0xff]  ;;  %v1301_v56 = vld [vmem:[#allocation2 + $0x78] sm:$0xff] }
  0x40   :  { %121 = vadd.xlane.f32.xlu1 %v120_v10  ;;  %v198_v54 = vsel %vm110_vm0, %v1293_v52, 0.0  ;;  %v195_v55 = vsel %vm110_vm0, %v1295_v53, 0.0  ;;  %v1303_v57 = vld [vmem:[#allocation2 + $0x70] sm:$0xff]  ;;  %v156_v58 = vsel %vm110_vm0, %v1301_v56, 0.0  ;;  %v1309_v60 = vld [vmem:[#allocation5 + $0x78] sm:$0xff] }
  0x41   :  { %118 = vadd.xlane.f32.xlu0 %v117_v11  ;;  %v153_v59 = vsel %vm110_vm0, %v1303_v57, 0.0  ;;  %v1311_v61 = vld [vmem:[#allocation5 + $0x70] sm:$0xff]  ;;  %v204_v62 = vsel %vm110_vm0, %v1309_v60, 0.0 }
  0x42   :  { %v201_v63 = vsel %vm110_vm0, %v1311_v61, 0.0 }
  0x44   :  { %169 = vadd.xlane.f32.xlu1 %v168_v16 }
  0x45   :  { %166 = vadd.xlane.f32.xlu0 %v165_v17 }
  0x48   :  { %127 = vadd.xlane.f32.xlu1 %v126_v18 }
  0x49   :  { %124 = vadd.xlane.f32.xlu0 %v123_v19 }
  0x4c   :  { %175 = vadd.xlane.f32.xlu1 %v174_v22 }
  0x4d   :  { %172 = vadd.xlane.f32.xlu0 %v171_v23 }
  0x50   :  { %133 = vadd.xlane.f32.xlu1 %v132_v26 }
  0x51   :  { %130 = vadd.xlane.f32.xlu0 %v129_v27 }
  0x54   :  { %181 = vadd.xlane.f32.xlu1 %v180_v30 }
  0x55   :  { %178 = vadd.xlane.f32.xlu0 %v177_v31 }
  0x58   :  { %139 = vadd.xlane.f32.xlu1 %v138_v34 }
  0x59   :  { %136 = vadd.xlane.f32.xlu0 %v135_v35 }
  0x5c   :  { %187 = vadd.xlane.f32.xlu1 %v186_v38 }
  0x5d   :  { %184 = vadd.xlane.f32.xlu0 %v183_v39 }
  0x60   :  { %145 = vadd.xlane.f32.xlu1 %v144_v42 }
  0x61   :  { %142 = vadd.xlane.f32.xlu0 %v141_v43 }
  0x64   :  { %193 = vadd.xlane.f32.xlu1 %v192_v46 }
  0x65   :  { %190 = vadd.xlane.f32.xlu0 %v189_v47 }
  0x68   :  { %151 = vadd.xlane.f32.xlu1 %v150_v50 }
  0x69   :  { %148 = vadd.xlane.f32.xlu0 %v147_v51 }
  0x6c   :  { %199 = vadd.xlane.f32.xlu1 %v198_v54 }
  0x6d   :  { %196 = vadd.xlane.f32.xlu0 %v195_v55 }
  0x70   :  { %157 = vadd.xlane.f32.xlu1 %v156_v58 }
  0x71   :  { %154 = vadd.xlane.f32.xlu0 %v153_v59 }
  0x74   :  { %205 = vadd.xlane.f32.xlu1 %v204_v62 }
  0x75   :  { %202 = vadd.xlane.f32.xlu0 %v201_v63 }
  0xc1   :  { %v161_v3 = vpop.xlane.xlu1 %160 }
  0xc2   :  { %v113_v4 = vpop.xlane.xlu0 %112 }
  0xc3   :  { %v207_v6 = vadd.f32 %v161_v3, %v113_v4 }
  0xc5   :  { %v223_v7 = vmul.f32 0.0078125, %v207_v6  ;;  %v164_v10 = vpop.xlane.xlu1 %163 }
  0xc6   :  { %v116_v11 = vpop.xlane.xlu0 %115 }
  0xc7   :  { %v1318_v16 = vsub.f32 %v1191_v1, %v223_v7  ;;  %v1321_v17 = vsub.f32 %v1189_v0, %v223_v7  ;;  %v208_v18 = vadd.f32 %v164_v10, %v116_v11 }
  0xc9   :  { %v224_v19 = vmul.f32 0.0078125, %v208_v18  ;;  %v271_v22 = vmul.f32 %v1318_v16, %v1318_v16  ;;  %v122_v23 = vpop.xlane.xlu1 %121  ;;  %v335_v1 = vmul.f32 %v1321_v17, %v1321_v17 }
  0xca   :  { %v119_v26 = vpop.xlane.xlu0 %118 }
  0xcb   :  { %v1326_v27 = vsub.f32 %v1199_v5, %v224_v19  ;;  %v1329_v30 = vsub.f32 %v1193_v2, %v224_v19  ;;  %v287_v31 = vsel %vm110_vm0, %v271_v22, 0.0  ;;  %v351_v42 = vsel %vm110_vm0, %v335_v1, 0.0 }
  0xcc   :  { %288 = vadd.xlane.f32.xlu0 %v287_v31 }
  0xcd   :  { %v272_v0 = vmul.f32 %v1326_v27, %v1326_v27  ;;  %v170_v34 = vpop.xlane.xlu1 %169  ;;  %v336_v38 = vmul.f32 %v1329_v30, %v1329_v30 }
  0xce   :  { %v167_v35 = vpop.xlane.xlu0 %166  ;;  %v210_v39 = vadd.f32 %v170_v34, %v122_v23 }
  0xcf   :  { %v209_v5 = vadd.f32 %v167_v35, %v119_v26  ;;  %v290_v2 = vsel %vm110_vm0, %v272_v0, 0.0  ;;  %v354_v51 = vsel %vm110_vm0, %v336_v38, 0.0 }
  0xd0   :  { %352 = vadd.xlane.f32.xlu0 %v351_v42  ;;  %291 = vadd.xlane.f32.xlu1 %v290_v2  ;;  %v226_v43 = vmul.f32 0.0078125, %v210_v39 }
  0xd1   :  { %v225_v46 = vmul.f32 0.0078125, %v209_v5  ;;  %v128_v47 = vpop.xlane.xlu1 %127 }
  0xd2   :  { %v125_v50 = vpop.xlane.xlu0 %124  ;;  %v1342_v54 = vsub.f32 %v1205_v8, %v226_v43  ;;  %v1345_v55 = vsub.f32 %v1213_v12, %v226_v43 }
  0xd3   :  { %v1348_v58 = vsub.f32 %v1207_v9, %v225_v46  ;;  %v1351_v59 = vsub.f32 %v1215_v13, %v225_v46 }
  0xd4   :  { %355 = vadd.xlane.f32.xlu1 %v354_v51  ;;  %v274_v62 = vmul.f32 %v1342_v54, %v1342_v54  ;;  %v338_v8 = vmul.f32 %v1345_v55, %v1345_v55 }
  0xd5   :  { %v273_v63 = vmul.f32 %v1348_v58, %v1348_v58  ;;  %v176_v3 = vpop.xlane.xlu1 %175  ;;  %v337_v12 = vmul.f32 %v1351_v59, %v1351_v59 }
  0xd6   :  { %v173_v4 = vpop.xlane.xlu0 %172  ;;  %v212_v9 = vadd.f32 %v176_v3, %v128_v47  ;;  %v296_v13 = vsel %vm110_vm0, %v274_v62, 0.0  ;;  %v360_v22 = vsel %vm110_vm0, %v338_v8, 0.0 }
  0xd7   :  { %v211_v6 = vadd.f32 %v173_v4, %v125_v50  ;;  %v293_v7 = vsel %vm110_vm0, %v273_v63, 0.0  ;;  %v357_v23 = vsel %vm110_vm0, %v337_v12, 0.0 }
  0xd8   :  { %297 = vadd.xlane.f32.xlu1 %v296_v13  ;;  %294 = vadd.xlane.f32.xlu0 %v293_v7  ;;  %v228_v10 = vmul.f32 0.0078125, %v212_v9 }
  0xd9   :  { %v227_v11 = vmul.f32 0.0078125, %v211_v6  ;;  %v134_v18 = vpop.xlane.xlu1 %133 }
  0xda   :  { %v131_v19 = vpop.xlane.xlu0 %130  ;;  %v1366_v26 = vsub.f32 %v1217_v14, %v228_v10  ;;  %v1369_v31 = vsub.f32 %v1229_v20, %v228_v10 }
  0xdb   :  { %v1372_v1 = vsub.f32 %v1219_v15, %v227_v11  ;;  %v1375_v0 = vsub.f32 %v1231_v21, %v227_v11 }
  0xdc   :  { %361 = vadd.xlane.f32.xlu1 %v360_v22  ;;  %358 = vadd.xlane.f32.xlu0 %v357_v23  ;;  %v276_v34 = vmul.f32 %v1366_v26, %v1366_v26  ;;  %v340_v20 = vmul.f32 %v1369_v31, %v1369_v31 }
  0xdd   :  { %v275_v35 = vmul.f32 %v1372_v1, %v1372_v1  ;;  %v182_v38 = vpop.xlane.xlu1 %181  ;;  %v339_v15 = vmul.f32 %v1375_v0, %v1375_v0 }
  0xde   :  { %v179_v14 = vpop.xlane.xlu0 %178  ;;  %v214_v39 = vadd.f32 %v182_v38, %v134_v18  ;;  %v302_v21 = vsel %vm110_vm0, %v276_v34, 0.0  ;;  %v366_v50 = vsel %vm110_vm0, %v340_v20, 0.0 }
  0xdf   :  { %v213_v5 = vadd.f32 %v179_v14, %v131_v19  ;;  %v299_v42 = vsel %vm110_vm0, %v275_v35, 0.0  ;;  %v363_v51 = vsel %vm110_vm0, %v339_v15, 0.0 }
  0xe0   :  { %303 = vadd.xlane.f32.xlu1 %v302_v21  ;;  %300 = vadd.xlane.f32.xlu0 %v299_v42  ;;  %v230_v2 = vmul.f32 0.0078125, %v214_v39  ;;  %v982_v39 = vld [vmem:[#allocation8 + $0x18] sm:$0xff]  }
  0xe1   :  { %v229_v43 = vmul.f32 0.0078125, %v213_v5  ;;  %v140_v46 = vpop.xlane.xlu1 %139  ;;  %924 = vmatprep.subr.bf16.mxu0 %v982_v39 }
  0xe2   :  { %v137_v47 = vpop.xlane.xlu0 %136  ;;  %v1390_v62 = vsub.f32 %v1237_v24, %v230_v2  ;;  %v1393_v63 = vsub.f32 %v1245_v28, %v230_v2  ;;  %925 = vmatpush3.bf16.msra.mxu0 %v982_v39  ;;  %v988_v39 = vld [vmem:[#allocation8] sm:$0xff]  }
  0xe3   :  { %v1396_v3 = vsub.f32 %v1239_v25, %v229_v43  ;;  %v1399_v4 = vsub.f32 %v1247_v29, %v229_v43 }
  0xe4   :  { %367 = vadd.xlane.f32.xlu1 %v366_v50  ;;  %364 = vadd.xlane.f32.xlu0 %v363_v51  ;;  %v278_v8 = vmul.f32 %v1390_v62, %v1390_v62  ;;  %v342_v28 = vmul.f32 %v1393_v63, %v1393_v63  ;;  %v984_v50 = vld [vmem:[#allocation8 + $0x10] sm:$0xff]  }
  0xe5   :  { %v277_v12 = vmul.f32 %v1396_v3, %v1396_v3  ;;  %v188_v9 = vpop.xlane.xlu1 %187  ;;  %v341_v25 = vmul.f32 %v1399_v4, %v1399_v4  ;;  %v985_v51 = vld [vmem:[#allocation7 + $0x10] sm:$0xff]   ;;  %926 = vmatprep.subr.bf16.mxu0 %v984_v50 }
  0xe6   :  { %v185_v24 = vpop.xlane.xlu0 %184  ;;  %v216_v6 = vadd.f32 %v188_v9, %v140_v46  ;;  %v308_v29 = vsel %vm110_vm0, %v278_v8, 0.0  ;;  %v372_v22 = vsel %vm110_vm0, %v342_v28, 0.0  ;;  %927 = vmatpush3.bf16.msra.mxu0 %v984_v50 }
  0xe7   :  { %v215_v13 = vadd.f32 %v185_v24, %v137_v47  ;;  %v305_v7 = vsel %vm110_vm0, %v277_v12, 0.0  ;;  %v369_v23 = vsel %vm110_vm0, %v341_v25, 0.0 }
  0xe8   :  { %309 = vadd.xlane.f32.xlu1 %v308_v29  ;;  %306 = vadd.xlane.f32.xlu0 %v305_v7  ;;  %v232_v10 = vmul.f32 0.0078125, %v216_v6 }
  0xe9   :  { %v231_v11 = vmul.f32 0.0078125, %v215_v13  ;;  %v146_v18 = vpop.xlane.xlu1 %145 }
  0xea   :  { %v143_v19 = vpop.xlane.xlu0 %142  ;;  %v1414_v34 = vsub.f32 %v1253_v32, %v232_v10  ;;  %v1417_v35 = vsub.f32 %v1261_v36, %v232_v10  ;;  %v983_v32 = vld [vmem:[#allocation7 + $0x18] sm:$0xff]   ;;  %v987_v10 = vld [vmem:[#allocation7 + $0x8] sm:$0xff]  }
  0xeb   :  { %v1420_v38 = vsub.f32 %v1255_v33, %v231_v11  ;;  %v1423_v14 = vsub.f32 %v1263_v37, %v231_v11  ;;  %948 = vmatprep.subr.bf16.mxu1 %v983_v32 }
  0xec   :  { %373 = vadd.xlane.f32.xlu1 %v372_v22  ;;  %370 = vadd.xlane.f32.xlu0 %v369_v23  ;;  %v280_v20 = vmul.f32 %v1414_v34, %v1414_v34  ;;  %v344_v36 = vmul.f32 %v1417_v35, %v1417_v35 }
  0xed   :  { %v279_v15 = vmul.f32 %v1420_v38, %v1420_v38  ;;  %v194_v5 = vpop.xlane.xlu1 %193  ;;  %v343_v33 = vmul.f32 %v1423_v14, %v1423_v14  ;;  %949 = vmatpush3.bf16.msra.mxu1 %v983_v32  ;;  %v989_v32 = vld [vmem:[#allocation7] sm:$0xff]  }
  0xee   :  { %v191_v21 = vpop.xlane.xlu0 %190  ;;  %v218_v37 = vadd.f32 %v194_v5, %v146_v18  ;;  %v314_v2 = vsel %vm110_vm0, %v280_v20, 0.0  ;;  %v378_v9 = vsel %vm110_vm0, %v344_v36, 0.0  ;;  %950 = vmatprep.subr.bf16.mxu1 %v985_v51 }
  0xef   :  { %v217_v42 = vadd.f32 %v191_v21, %v143_v19  ;;  %v311_v43 = vsel %vm110_vm0, %v279_v15, 0.0  ;;  %v375_v24 = vsel %vm110_vm0, %v343_v33, 0.0 }
  0xf0   :  { %315 = vadd.xlane.f32.xlu1 %v314_v2  ;;  %312 = vadd.xlane.f32.xlu0 %v311_v43  ;;  %v234_v46 = vmul.f32 0.0078125, %v218_v37 }
  0xf1   :  { %v233_v47 = vmul.f32 0.0078125, %v217_v42  ;;  %v152_v8 = vpop.xlane.xlu1 %151  ;;  %951 = vmatpush3.bf16.msra.mxu1 %v985_v51 }
  0xf2   :  { %v149_v12 = vpop.xlane.xlu0 %148  ;;  %v1438_v28 = vsub.f32 %v1269_v40, %v234_v46  ;;  %v1441_v25 = vsub.f32 %v1277_v44, %v234_v46  ;;  %v986_v40 = vld [vmem:[#allocation8 + $0x8] sm:$0xff]   ;;  %952 = vmatprep.subr.bf16.mxu1 %v987_v10 }
  0xf3   :  { %v1444_v6 = vsub.f32 %v1271_v41, %v233_v47  ;;  %v1447_v13 = vsub.f32 %v1279_v45, %v233_v47  ;;  %928 = vmatprep.subr.bf16.mxu0 %v986_v40 }
  0xf4   :  { %379 = vadd.xlane.f32.xlu1 %v378_v9  ;;  %376 = vadd.xlane.f32.xlu0 %v375_v24  ;;  %v282_v29 = vmul.f32 %v1438_v28, %v1438_v28  ;;  %v346_v41 = vmul.f32 %v1441_v25, %v1441_v25 }
  0xf5   :  { %v281_v7 = vmul.f32 %v1444_v6, %v1444_v6  ;;  %v200_v44 = vpop.xlane.xlu1 %199  ;;  %v345_v45 = vmul.f32 %v1447_v13, %v1447_v13  ;;  %929 = vmatpush3.bf16.msra.mxu0 %v986_v40  ;;  %953 = vmatpush3.bf16.msra.mxu1 %v987_v10 }
  0xf6   :  { %v197_v11 = vpop.xlane.xlu0 %196  ;;  %v220_v18 = vadd.f32 %v200_v44, %v152_v8  ;;  %v320_v22 = vsel %vm110_vm0, %v282_v29, 0.0  ;;  %v384_v36 = vsel %vm110_vm0, %v346_v41, 0.0  ;;  %930 = vmatprep.subr.bf16.mxu0 %v988_v39  ;;  %954 = vmatprep.subr.bf16.mxu1 %v989_v32 }
  0xf7   :  { %v219_v19 = vadd.f32 %v197_v11, %v149_v12  ;;  %v317_v23 = vsel %vm110_vm0, %v281_v7, 0.0  ;;  %v381_v33 = vsel %vm110_vm0, %v345_v45, 0.0 }
  0xf8   :  { %321 = vadd.xlane.f32.xlu1 %v320_v22  ;;  %318 = vadd.xlane.f32.xlu0 %v317_v23  ;;  %v236_v20 = vmul.f32 0.0078125, %v220_v18 }
  0xf9   :  { %v235_v15 = vmul.f32 0.0078125, %v219_v19  ;;  %v158_v5 = vpop.xlane.xlu1 %157  ;;  %931 = vmatpush3.bf16.msra.mxu0 %v988_v39  ;;  %955 = vmatpush3.bf16.msra.mxu1 %v989_v32 }
  0xfa   :  { %v155_v21 = vpop.xlane.xlu0 %154  ;;  %v1462_v37 = vsub.f32 %v1285_v48, %v236_v20  ;;  %v1465_v42 = vsub.f32 %v1293_v52, %v236_v20 }
  0xfb   :  { %v1468_v2 = vsub.f32 %v1287_v49, %v235_v15  ;;  %v1471_v43 = vsub.f32 %v1295_v53, %v235_v15 }
  0xfc   :  { %385 = vadd.xlane.f32.xlu1 %v384_v36  ;;  %382 = vadd.xlane.f32.xlu0 %v381_v33  ;;  %v284_v46 = vmul.f32 %v1462_v37, %v1462_v37  ;;  %v348_v52 = vmul.f32 %v1465_v42, %v1465_v42 }
  0xfd   :  { %v283_v47 = vmul.f32 %v1468_v2, %v1468_v2  ;;  %v206_v48 = vpop.xlane.xlu1 %205  ;;  %v347_v49 = vmul.f32 %v1471_v43, %v1471_v43 }
  0xfe   :  { %v203_v50 = vpop.xlane.xlu0 %202  ;;  %v222_v53 = vadd.f32 %v206_v48, %v158_v5  ;;  %v326_v8 = vsel %vm110_vm0, %v284_v46, 0.0  ;;  %v390_v29 = vsel %vm110_vm0, %v348_v52, 0.0 }
  0xff   :  { %v221_v51 = vadd.f32 %v203_v50, %v155_v21  ;;  %v323_v12 = vsel %vm110_vm0, %v283_v47, 0.0  ;;  %v387_v7 = vsel %vm110_vm0, %v347_v49, 0.0 }
 0x100   :  { %327 = vadd.xlane.f32.xlu1 %v326_v8  ;;  %324 = vadd.xlane.f32.xlu0 %v323_v12  ;;  %v238_v9 = vmul.f32 0.0078125, %v222_v53 }
 0x101   :  { %v237_v24 = vmul.f32 0.0078125, %v221_v51 }
 0x102   :  { %v1486_v40 = vsub.f32 %v1301_v56, %v238_v9  ;;  %v1489_v10 = vsub.f32 %v1309_v60, %v238_v9 }
 0x103   :  { %v1492_v44 = vsub.f32 %v1303_v57, %v237_v24  ;;  %v1495_v11 = vsub.f32 %v1311_v61, %v237_v24 }
 0x104   :  { %391 = vadd.xlane.f32.xlu1 %v390_v29  ;;  %388 = vadd.xlane.f32.xlu0 %v387_v7  ;;  %v286_v41 = vmul.f32 %v1486_v40, %v1486_v40  ;;  %v350_v60 = vmul.f32 %v1489_v10, %v1489_v10 }
 0x105   :  { %v285_v45 = vmul.f32 %v1492_v44, %v1492_v44  ;;  %v349_v57 = vmul.f32 %v1495_v11, %v1495_v11 }
 0x106   :  { %v332_v56 = vsel %vm110_vm0, %v286_v41, 0.0  ;;  %v396_v61 = vsel %vm110_vm0, %v350_v60, 0.0 }
 0x107   :  { %v329_v18 = vsel %vm110_vm0, %v285_v45, 0.0  ;;  %v393_v19 = vsel %vm110_vm0, %v349_v57, 0.0 }
 0x108   :  { %333 = vadd.xlane.f32.xlu1 %v332_v56  ;;  %330 = vadd.xlane.f32.xlu0 %v329_v18 }
 0x10c   :  { %397 = vadd.xlane.f32.xlu1 %v396_v61  ;;  %394 = vadd.xlane.f32.xlu0 %v393_v19 }
 0x155   :  { %v289_v22 = vpop.xlane.xlu0 %288 }
 0x159   :  { %v292_v23 = vpop.xlane.xlu1 %291  ;;  %v353_v20 = vpop.xlane.xlu0 %352 }
 0x15a   :  { %v399_v15 = vadd.f32 %v353_v20, %v289_v22 }
 0x15c   :  { %v415_v39 = vmul.f32 0.0078125, %v399_v15 }
 0x15d   :  { %v356_v32 = vpop.xlane.xlu1 %355 }
 0x15e   :  { %v431_v5 = vadd.f32 1e-05, %v415_v39  ;;  %v400_v21 = vadd.f32 %v356_v32, %v292_v23 }
 0x160   :  { %v416_v36 = vmul.f32 0.0078125, %v400_v21  ;;  %990 = vrsqrt.f32 %v431_v5 }
 0x161   :  { %v298_v33 = vpop.xlane.xlu1 %297  ;;  %v295_v46 = vpop.xlane.xlu0 %294 }
 0x162   :  { %v432_v47 = vadd.f32 1e-05, %v416_v36 }
 0x164   :  { %992 = vrsqrt.f32 %v432_v47 }
 0x165   :  { %v362_v48 = vpop.xlane.xlu1 %361  ;;  %v359_v50 = vpop.xlane.xlu0 %358 }
 0x166   :  { %v402_v52 = vadd.f32 %v362_v48, %v298_v33  ;;  %v401_v49 = vadd.f32 %v359_v50, %v295_v46 }
 0x168   :  { %v418_v53 = vmul.f32 0.0078125, %v402_v52  ;;  %v417_v51 = vmul.f32 0.0078125, %v401_v49 }
 0x169   :  { %v304_v8 = vpop.xlane.xlu1 %303  ;;  %v301_v12 = vpop.xlane.xlu0 %300 }
 0x16a   :  { %v434_v9 = vadd.f32 1e-05, %v418_v53  ;;  %v433_v24 = vadd.f32 1e-05, %v417_v51 }
 0x16c   :  { %994 = vrsqrt.f32 %v434_v9 }
 0x16d   :  { %996 = vrsqrt.f32 %v433_v24  ;;  %v368_v29 = vpop.xlane.xlu1 %367  ;;  %v365_v7 = vpop.xlane.xlu0 %364 }
 0x16e   :  { %v991_v41 = vpop.eup %990  ;;  %v404_v45 = vadd.f32 %v368_v29, %v304_v8  ;;  %v403_v56 = vadd.f32 %v365_v7, %v301_v12 }
 0x16f   :  { %v487_v22 = vmul.f32 %v991_v41, %v1321_v17  ;;  %v463_v23 = vmul.f32 %v991_v41, %v1318_v16 }
 0x170   :  { %v420_v18 = vmul.f32 0.0078125, %v404_v45  ;;  %v419_v60 = vmul.f32 0.0078125, %v403_v56 }
 0x171   :  { %v993_v57 = vpop.eup %992  ;;  %v310_v61 = vpop.xlane.xlu1 %309 }
 0x172   :  { %v307_v19 = vpop.xlane.xlu0 %306  ;;  %v436_v20 = vadd.f32 1e-05, %v420_v18  ;;  %v435_v15 = vadd.f32 1e-05, %v419_v60  ;;  %v488_v39 = vmul.f32 %v993_v57, %v1329_v30  ;;  %v464_v32 = vmul.f32 %v993_v57, %v1326_v27 }
 0x174   :  { %998 = vrsqrt.f32 %v436_v20  ;;  %v503_v5 = vpack.c.bf16 %v488_v39, %v487_v22  ;;  %v479_v21 = vpack.c.bf16 %v464_v32, %v463_v23 }
 0x175   :  { %1000 = vrsqrt.f32 %v435_v15  ;;  %v374_v36 = vpop.xlane.xlu1 %373 }
 0x176   :  { %v371_v33 = vpop.xlane.xlu0 %370  ;;  %v406_v46 = vadd.f32 %v374_v36, %v310_v61  ;;  %932 = vmatprep.mubr.msk.bf16.mxu0 %vm110_vm0, %v503_v5  ;;  %956 = vmatprep.mubr.msk.bf16.mxu1 %vm110_vm0, %v479_v21 }
 0x177   :  { %v405_v47 = vadd.f32 %v371_v33, %v307_v19 }
 0x178   :  { %v422_v17 = vmul.f32 0.0078125, %v406_v46 }
 0x179   :  { %v421_v16 = vmul.f32 0.0078125, %v405_v47  ;;  %v995_v48 = vpop.eup %994  ;;  %v316_v50 = vpop.xlane.xlu1 %315 }
 0x17a   :  { %v313_v52 = vpop.xlane.xlu0 %312  ;;  %v997_v30 = vpop.eup %996  ;;  %v438_v49 = vadd.f32 1e-05, %v422_v17  ;;  %v490_v53 = vmul.f32 %v995_v48, %v1345_v55  ;;  %v466_v51 = vmul.f32 %v995_v48, %v1342_v54 }
 0x17b   :  { %v437_v27 = vadd.f32 1e-05, %v421_v16  ;;  %v489_v8 = vmul.f32 %v997_v30, %v1351_v59  ;;  %v465_v12 = vmul.f32 %v997_v30, %v1348_v58 }
 0x17c   :  { %1002 = vrsqrt.f32 %v438_v49 }
 0x17d   :  { %1004 = vrsqrt.f32 %v437_v27  ;;  %v380_v9 = vpop.xlane.xlu1 %379  ;;  %v504_v29 = vpack.c.bf16 %v490_v53, %v489_v8  ;;  %v480_v7 = vpack.c.bf16 %v466_v51, %v465_v12 }
 0x17e   :  { %v377_v24 = vpop.xlane.xlu0 %376  ;;  %v408_v41 = vadd.f32 %v380_v9, %v316_v50 }
 0x17f   :  { %v407_v45 = vadd.f32 %v377_v24, %v313_v52  ;;  %933 = vmatmul.mubr.msk.bf16.vlgmr.msra.gmra.mxu0 %vm110_vm0, %v504_v29  ;;  %957 = vmatmul.mubr.msk.bf16.vlgmr.msra.gmra.mxu1 %vm110_vm0, %v480_v7 }
 0x180   :  { %v424_v56 = vmul.f32 0.0078125, %v408_v41 }
 0x181   :  { %v423_v55 = vmul.f32 0.0078125, %v407_v45  ;;  %v999_v18 = vpop.eup %998  ;;  %v322_v54 = vpop.xlane.xlu1 %321 }
 0x182   :  { %v319_v60 = vpop.xlane.xlu0 %318  ;;  %v1001_v59 = vpop.eup %1000  ;;  %v440_v57 = vadd.f32 1e-05, %v424_v56  ;;  %v492_v61 = vmul.f32 %v999_v18, %v1369_v31  ;;  %v468_v19 = vmul.f32 %v999_v18, %v1366_v26 }
 0x183   :  { %v439_v58 = vadd.f32 1e-05, %v423_v55  ;;  %v491_v22 = vmul.f32 %v1001_v59, %v1375_v0  ;;  %v467_v23 = vmul.f32 %v1001_v59, %v1372_v1 }
 0x184   :  { %1006 = vrsqrt.f32 %v440_v57 }
 0x185   :  { %1008 = vrsqrt.f32 %v439_v58  ;;  %v386_v20 = vpop.xlane.xlu1 %385  ;;  %v505_v39 = vpack.c.bf16 %v492_v61, %v491_v22  ;;  %v481_v32 = vpack.c.bf16 %v468_v19, %v467_v23 }
 0x186   :  { %v383_v15 = vpop.xlane.xlu0 %382  ;;  %v410_v5 = vadd.f32 %v386_v20, %v322_v54 }
 0x187   :  { %v409_v21 = vadd.f32 %v383_v15, %v319_v60  ;;  %936 = vmatprep.mubr.msk.bf16.mxu0 %vm110_vm0, %v505_v39  ;;  %960 = vmatprep.mubr.msk.bf16.mxu1 %vm110_vm0, %v481_v32 }
 0x188   :  { %v426_v36 = vmul.f32 0.0078125, %v410_v5 }
 0x189   :  { %v425_v31 = vmul.f32 0.0078125, %v409_v21  ;;  %v1003_v33 = vpop.eup %1002  ;;  %v328_v26 = vpop.xlane.xlu1 %327 }
 0x18a   :  { %v325_v46 = vpop.xlane.xlu0 %324  ;;  %v1005_v0 = vpop.eup %1004  ;;  %v442_v47 = vadd.f32 1e-05, %v426_v36  ;;  %v494_v17 = vmul.f32 %v1003_v33, %v1393_v63  ;;  %v470_v16 = vmul.f32 %v1003_v33, %v1390_v62 }
 0x18b   :  { %v441_v1 = vadd.f32 1e-05, %v425_v31  ;;  %v493_v48 = vmul.f32 %v1005_v0, %v1399_v4  ;;  %v469_v50 = vmul.f32 %v1005_v0, %v1396_v3 }
 0x18c   :  { %1010 = vrsqrt.f32 %v442_v47  ;;  %v1560_v47 = vld [vmem:[%s1588_s4] ss:$0 sm:$0xff]  ;;  %s1142_s4 = smov [#allocation10]  }
 0x18d   :  { %1012 = vrsqrt.f32 %v441_v1  ;;  %v392_v52 = vpop.xlane.xlu1 %391  ;;  %v506_v49 = vpack.c.bf16 %v494_v17, %v493_v48  ;;  %v482_v27 = vpack.c.bf16 %v470_v16, %v469_v50  ;;  %s861_s17 = sshll.u32 %s1142_s4, 4  ;;  %s862_s17 = int_to_ptr.vmem [resolvable:$true] %s861_s17 }
 0x18e   :  { %v389_v30 = vpop.xlane.xlu0 %388  ;;  %v412_v53 = vadd.f32 %v392_v52, %v328_v26  ;;  %s1105_s18 = scalar_lea.vmem %s862_s17, 2048  ;;  %p1110_p7 = scmp.lt.s32.totalorder %s862_s17, %s862_s17 }
 0x18f   :  { %v411_v51 = vadd.f32 %v389_v30, %v325_v46  ;;  %937 = vmatmul.mubr.msk.bf16.gmra.mxu0 %vm110_vm0, %v506_v49  ;;  %961 = vmatmul.mubr.msk.bf16.gmra.mxu1 %vm110_vm0, %v482_v27  ;;  %p1106_p6 = scmp.ne.s32.totalorder %s862_s17, %s1105_s18  ;;  %p1111_p8 = scmp.lt.s32.totalorder %s1105_s18, %s1105_s18 }
 0x190   :  { %v428_v8 = vmul.f32 0.0078125, %v412_v53 }
 0x191   :  { %v427_v63 = vmul.f32 0.0078125, %v411_v51  ;;  %v1007_v12 = vpop.eup %1006  ;;  %v334_v62 = vpop.xlane.xlu1 %333  ;;  %p1112_p9 = por %p1111_p8, %p1110_p7 }
 0x192   :  { %v331_v9 = vpop.xlane.xlu0 %330  ;;  %v1009_v4 = vpop.eup %1008  ;;  %v444_v24 = vadd.f32 1e-05, %v428_v8  ;;  %v496_v29 = vmul.f32 %v1007_v12, %v1417_v35  ;;  %v472_v7 = vmul.f32 %v1007_v12, %v1414_v34 }
 0x193   :  { %v443_v3 = vadd.f32 1e-05, %v427_v63  ;;  %v495_v41 = vmul.f32 %v1009_v4, %v1423_v14  ;;  %v471_v45 = vmul.f32 %v1009_v4, %v1420_v38  ;;  %p1113_p10 = pnand %p1112_p9, %p1106_p6 }
 0x194   :  { %1014 = vrsqrt.f32 %v444_v24 }
 0x195   :  { %1016 = vrsqrt.f32 %v443_v3  ;;  %v398_v56 = vpop.xlane.xlu1 %397  ;;  %v507_v18 = vpack.c.bf16 %v496_v29, %v495_v41  ;;  %v483_v54 = vpack.c.bf16 %v472_v7, %v471_v45 }
 0x196   :  { %v395_v55 = vpop.xlane.xlu0 %394  ;;  %v414_v60 = vadd.f32 %v398_v56, %v334_v62 }
 0x197   :  { %v413_v59 = vadd.f32 %v395_v55, %v331_v9  ;;  %940 = vmatprep.mubr.msk.bf16.mxu0 %vm110_vm0, %v507_v18  ;;  %964 = vmatprep.mubr.msk.bf16.mxu1 %vm110_vm0, %v483_v54 }
 0x198   :  { %v430_v57 = vmul.f32 0.0078125, %v414_v60 }
 0x199   :  { %v429_v35 = vmul.f32 0.0078125, %v413_v59  ;;  %v1011_v58 = vpop.eup %1010 }
 0x19a   :  { %v1013_v34 = vpop.eup %1012  ;;  %v446_v61 = vadd.f32 1e-05, %v430_v57  ;;  %v498_v38 = vmul.f32 %v1011_v58, %v1441_v25  ;;  %v474_v19 = vmul.f32 %v1011_v58, %v1438_v28 }
 0x19b   :  { %v445_v14 = vadd.f32 1e-05, %v429_v35  ;;  %v497_v22 = vmul.f32 %v1013_v34, %v1447_v13  ;;  %v473_v23 = vmul.f32 %v1013_v34, %v1444_v6 }
 0x19c   :  { %1018 = vrsqrt.f32 %v446_v61 }
 0x19d   :  { %1020 = vrsqrt.f32 %v445_v14  ;;  %v508_v20 = vpack.c.bf16 %v498_v38, %v497_v22  ;;  %v484_v15 = vpack.c.bf16 %v474_v19, %v473_v23 }
 0x19f   :  { %941 = vmatmul.mubr.msk.bf16.gmra.mxu0 %vm110_vm0, %v508_v20  ;;  %965 = vmatmul.mubr.msk.bf16.gmra.mxu1 %vm110_vm0, %v484_v15 }
 0x1a1   :  { %v1015_v39 = vpop.eup %1014 }
 0x1a2   :  { %v1017_v32 = vpop.eup %1016  ;;  %v500_v5 = vmul.f32 %v1015_v39, %v1465_v42  ;;  %v476_v25 = vmul.f32 %v1015_v39, %v1462_v37 }
 0x1a3   :  { %v499_v28 = vmul.f32 %v1017_v32, %v1471_v43  ;;  %v475_v13 = vmul.f32 %v1017_v32, %v1468_v2 }
 0x1a5   :  { %v509_v21 = vpack.c.bf16 %v500_v5, %v499_v28  ;;  %v485_v6 = vpack.c.bf16 %v476_v25, %v475_v13 }
 0x1a7   :  { %944 = vmatprep.mubr.msk.bf16.mxu0 %vm110_vm0, %v509_v21  ;;  %968 = vmatprep.mubr.msk.bf16.mxu1 %vm110_vm0, %v485_v6 }
 0x1a9   :  { %v1019_v36 = vpop.eup %1018 }
 0x1aa   :  { %v1021_v31 = vpop.eup %1020  ;;  %v502_v33 = vmul.f32 %v1019_v36, %v1489_v10  ;;  %v478_v26 = vmul.f32 %v1019_v36, %v1486_v40 }
 0x1ab   :  { %v501_v42 = vmul.f32 %v1021_v31, %v1495_v11  ;;  %v477_v37 = vmul.f32 %v1021_v31, %v1492_v44 }
 0x1ad   :  { %v510_v46 = vpack.c.bf16 %v502_v33, %v501_v42  ;;  %v486_v43 = vpack.c.bf16 %v478_v26, %v477_v37 }
 0x1af   :  { %945 = vmatmul.mubr.msk.bf16.gmra.mxu0 %vm110_vm0, %v510_v46  ;;  %969 = vmatmul.mubr.msk.bf16.gmra.mxu1 %vm110_vm0, %v486_v43 }
 0x23f   :  { %v934_v2 = vpop.f32.mrf.mxu0  ;;  %v958_v0 = vpop.f32.mrf.mxu1 }
 0x240   :  { %v763_v10 = vadd.f32 %v958_v0, %v934_v2 }
 0x241   :  { %v609_v1 = vpop.f32.mrf.mxu0  ;;  %v754_v40 = vpop.f32.mrf.mxu1 }
 0x242   :  { %v826_v11 = vadd.f32 %v1560_v47, %v763_v10  ;;  %v755_v17 = vadd.f32 %v754_v40, %v609_v1 }
 0x243   :  { %v935_v44 = vpop.f32.mrf.mxu0  ;;  %v959_v16 = vpop.f32.mrf.mxu1 }
 0x244   :  { %842 = vst [vmem:[#allocation10 + $0x10] sm:$0xff] %v826_v11  ;;  %v824_v48 = vadd.f32 %v1560_v47, %v755_v17  ;;  %v766_v50 = vadd.f32 %v959_v16, %v935_v44 }
 0x245   :  { %v612_v52 = vpop.f32.mrf.mxu0  ;;  %v757_v30 = vpop.f32.mrf.mxu1 }
 0x246   :  { %840 = vst [vmem:[#allocation10] sm:$0xff] %v824_v48  ;;  %v827_v49 = vadd.f32 %v1560_v47, %v766_v50  ;;  %v758_v27 = vadd.f32 %v757_v30, %v612_v52 }
 0x248   :  { %843 = vst [vmem:[#allocation10 + $0x18] sm:$0xff] %v827_v49  ;;  %v825_v53 = vadd.f32 %v1560_v47, %v758_v27 }
 0x24a   :  { %841 = vst [vmem:[#allocation10 + $0x8] sm:$0xff] %v825_v53 }
 0x24f   :  { %v938_v51 = vpop.f32.mrf.mxu0  ;;  %v962_v8 = vpop.f32.mrf.mxu1 }
 0x250   :  { %v779_v63 = vadd.f32 %v962_v8, %v938_v51 }
 0x251   :  { %v625_v12 = vpop.f32.mrf.mxu0  ;;  %v770_v62 = vpop.f32.mrf.mxu1 }
 0x252   :  { %v830_v9 = vadd.f32 %v1560_v47, %v779_v63  ;;  %v771_v4 = vadd.f32 %v770_v62, %v625_v12 }
 0x253   :  { %v939_v24 = vpop.f32.mrf.mxu0  ;;  %v963_v3 = vpop.f32.mrf.mxu1 }
 0x254   :  { %846 = vst [vmem:[#allocation10 + $0x30] sm:$0xff] %v830_v9  ;;  %v828_v29 = vadd.f32 %v1560_v47, %v771_v4  ;;  %v782_v7 = vadd.f32 %v963_v3, %v939_v24 }
 0x255   :  { %v628_v41 = vpop.f32.mrf.mxu0  ;;  %v773_v45 = vpop.f32.mrf.mxu1 }
 0x256   :  { %844 = vst [vmem:[#allocation10 + $0x20] sm:$0xff] %v828_v29  ;;  %v831_v56 = vadd.f32 %v1560_v47, %v782_v7  ;;  %v774_v55 = vadd.f32 %v773_v45, %v628_v41 }
 0x258   :  { %847 = vst [vmem:[#allocation10 + $0x38] sm:$0xff] %v831_v56  ;;  %v829_v18 = vadd.f32 %v1560_v47, %v774_v55 }
 0x25a   :  { %845 = vst [vmem:[#allocation10 + $0x28] sm:$0xff] %v829_v18 }
 0x25f   :  { %v942_v54 = vpop.f32.mrf.mxu0  ;;  %v966_v60 = vpop.f32.mrf.mxu1 }
 0x260   :  { %v795_v59 = vadd.f32 %v966_v60, %v942_v54 }
 0x261   :  { %v641_v57 = vpop.f32.mrf.mxu0  ;;  %v786_v35 = vpop.f32.mrf.mxu1 }
 0x262   :  { %v834_v58 = vadd.f32 %v1560_v47, %v795_v59  ;;  %v787_v34 = vadd.f32 %v786_v35, %v641_v57 }
 0x263   :  { %v943_v61 = vpop.f32.mrf.mxu0  ;;  %v967_v14 = vpop.f32.mrf.mxu1 }
 0x264   :  { %850 = vst [vmem:[#allocation10 + $0x50] sm:$0xff] %v834_v58  ;;  %v832_v38 = vadd.f32 %v1560_v47, %v787_v34  ;;  %v798_v19 = vadd.f32 %v967_v14, %v943_v61 }
 0x265   :  { %v644_v22 = vpop.f32.mrf.mxu0  ;;  %v789_v23 = vpop.f32.mrf.mxu1 }
 0x266   :  { %848 = vst [vmem:[#allocation10 + $0x40] sm:$0xff] %v832_v38  ;;  %v835_v20 = vadd.f32 %v1560_v47, %v798_v19  ;;  %v790_v15 = vadd.f32 %v789_v23, %v644_v22 }
 0x268   :  { %851 = vst [vmem:[#allocation10 + $0x58] sm:$0xff] %v835_v20  ;;  %v833_v39 = vadd.f32 %v1560_v47, %v790_v15 }
 0x26a   :  { %849 = vst [vmem:[#allocation10 + $0x48] sm:$0xff] %v833_v39 }
 0x26f   :  { %v946_v32 = vpop.f32.mrf.mxu0  ;;  %v970_v5 = vpop.f32.mrf.mxu1 }
 0x270   :  { %v811_v25 = vadd.f32 %v970_v5, %v946_v32 }
 0x271   :  { %v657_v28 = vpop.f32.mrf.mxu0  ;;  %v802_v13 = vpop.f32.mrf.mxu1 }
 0x272   :  { %v838_v21 = vadd.f32 %v1560_v47, %v811_v25  ;;  %v803_v6 = vadd.f32 %v802_v13, %v657_v28 }
 0x273   :  { %v947_v36 = vpop.f32.mrf.mxu0  ;;  %v971_v31 = vpop.f32.mrf.mxu1 }
 0x274   :  { %854 = vst [vmem:[#allocation10 + $0x70] sm:$0xff] %v838_v21  ;;  %v836_v33 = vadd.f32 %v1560_v47, %v803_v6  ;;  %v814_v26 = vadd.f32 %v971_v31, %v947_v36 }
 0x275   :  { %v660_v42 = vpop.f32.mrf.mxu0  ;;  %v805_v37 = vpop.f32.mrf.mxu1 }
 0x276   :  { %852 = vst [vmem:[#allocation10 + $0x60] sm:$0xff] %v836_v33  ;;  %v839_v46 = vadd.f32 %v1560_v47, %v814_v26  ;;  %v806_v43 = vadd.f32 %v805_v37, %v660_v42 }
 0x278   :  { %855 = vst [vmem:[#allocation10 + $0x78] sm:$0xff] %v839_v46  ;;  %v837_v2 = vadd.f32 %v1560_v47, %v806_v43 }
 0x27a   :  { %853 = vst [vmem:[#allocation10 + $0x68] sm:$0xff] %v837_v2 }
 0x27b   :  { %1116 = shalt.err (!%p1113_p10)
}
 0x27c   :  { %867 = dma.vmem_to_hbm [thread:$0]  %s862_s17, 2048, %s1589_s5, [#allocation4], %s1136_s27, %s1136_s27, %s1137_s28  }
 0x27d   :  { %1131 = dma.done.wait [#allocation4], 2048  }
 0x27e   :  { %1132 = vsyncadd [#allocation4], 4294965248 }
 0x27f   :  { %871 = vsyncpa [#allocation3], 1 }
 0x280   :  { %872 = vsyncpa [#allocation6], 1 }
 0x281   :  { %873 = vsyncpa [#allocation9], 1 }
 0x282   :  { %874 = vsyncpa [#allocation4], 1 }

</bundles_post_ra>
